<compile_context>
chip_gen: v5e
topology: v5e:2x2
jax: 0.10.0
libtpu: 0.0.40
codegen_flags: <defaults>
</compile_context>

<pallas_src>
import functools

import jax
import jax.numpy as jnp
from jax import lax
from jax.experimental import pallas as pl
from jax.experimental.pallas import tpu as pltpu


# --------------------------------------------------------------------------
# small helpers
# --------------------------------------------------------------------------
def _round_up(x, m):
    return (x + m - 1) // m * m


def _pick_tile(dim, pref, align):
    t = pref if dim >= pref else _round_up(dim, align)
    return t, _round_up(dim, t)


def _pick_k_tile(K):
    Kp = _round_up(K, 128)
    if Kp <= 640:
        return Kp, Kp
    for c in (512, 384, 256, 128):
        if Kp % c == 0:
            return c, Kp
    return 128, Kp


def _row_tile(M, cap=512):
    """Pick a row tile that divides M when possible (avoids a pad copy)."""
    for t in (cap, 256, 128, 64, 32, 16, 8):
        if t <= M and M % t == 0:
            return t, M
    return 8, _round_up(M, 8)


# --------------------------------------------------------------------------
# Pallas kernel 1: tiled matmul + bias + optional activation (fc layer)
# --------------------------------------------------------------------------
def _matmul_kernel(x_ref, w_ref, b_ref, o_ref, acc_ref, *, activation):
    k = pl.program_id(2)

    @pl.when(k == 0)
    def _():
        # fold the bias into the accumulator init (no per-K re-apply)
        acc_ref[...] = jnp.zeros_like(acc_ref) + b_ref[...]

    acc_ref[...] += jnp.dot(x_ref[...], w_ref[...],
                            preferred_element_type=jnp.float32)

    @pl.when(k == pl.num_programs(2) - 1)
    def _():
        y = acc_ref[...]
        if activation == "relu":
            y = jnp.maximum(y, 0.0)
        elif activation == "tanh":
            y = jnp.tanh(y)
        o_ref[...] = y.astype(o_ref.dtype)


def matmul_bias(x, w, b, activation="none", out_dtype=jnp.bfloat16):
    """y = activation(x @ w + b);  x:(M,K)  w:(K,N)  b:(N,).  bf16 operands, f32 acc."""
    M, K = x.shape
    K2, N = w.shape
    assert K == K2
    tm, Mp = _pick_tile(M, 256, 8)
    tn, Np = _pick_tile(N, 256, 128)
    tk, Kp = _pick_k_tile(K)

    xp = jnp.pad(x.astype(jnp.bfloat16), ((0, Mp - M), (0, Kp - K)))
    wp = jnp.pad(w.astype(jnp.bfloat16), ((0, Kp - K), (0, Np - N)))
    bp = jnp.pad(b.astype(jnp.float32), (0, Np - N)).reshape(1, Np)

    grid = (Mp // tm, Np // tn, Kp // tk)
    out = pl.pallas_call(
        functools.partial(_matmul_kernel, activation=activation),
        out_shape=jax.ShapeDtypeStruct((Mp, Np), out_dtype),
        grid_spec=pltpu.PrefetchScalarGridSpec(
            num_scalar_prefetch=0,
            grid=grid,
            in_specs=[
                pl.BlockSpec((tm, tk), lambda i, j, k: (i, k)),
                pl.BlockSpec((tk, tn), lambda i, j, k: (k, j)),
                pl.BlockSpec((1, tn), lambda i, j, k: (0, j)),
            ],
            out_specs=pl.BlockSpec((tm, tn), lambda i, j, k: (i, j)),
            scratch_shapes=[pltpu.VMEM((tm, tn), jnp.float32)],
        ),
        compiler_params=pltpu.CompilerParams(
            dimension_semantics=("parallel", "parallel", "arbitrary")),
    )(xp, wp, bp)
    return out[:M, :N]


# --------------------------------------------------------------------------
# Pallas kernel 2: direct 3x3 conv (no im2col), bias + optional activation
# --------------------------------------------------------------------------
def _conv3x3_kernel(x0_ref, x1_ref, x2_ref, w_ref, b_ref, o_ref, acc_ref, *,
                    activation, out_w):
    k = pl.program_id(3)

    @pl.when(k == 0)
    def _():
        acc_ref[...] = jnp.zeros_like(acc_ref) + b_ref[...]

    acc = acc_ref[...]
    for dy, xr in enumerate((x0_ref, x1_ref, x2_ref)):
        row = xr[...]                         # (W+2, tcin) bf16, already in VMEM
        for dx in range(3):
            seg = row[dx:dx + out_w, :]       # dx tap = static VMEM slice
            acc += jnp.dot(seg, w_ref[dy, dx],
                           preferred_element_type=jnp.float32)
    acc_ref[...] = acc

    @pl.when(k == pl.num_programs(3) - 1)
    def _():
        y = acc_ref[...]
        if activation == "relu":
            y = jnp.maximum(y, 0.0)
        elif activation == "tanh":
            y = jnp.tanh(y)
        o_ref[...] = y.astype(o_ref.dtype)


def conv3x3(x_nhwc, w_hwio, b, activation="none", out_dtype=jnp.bfloat16):
    """3x3 conv, stride 1, pad 1 (nn.Conv2d(Cin, Cout, 3, 1, 1) semantics).

    The padded input array is passed three times (same buffer, dy-shifted row
    index maps); the Cin axis is the innermost reduction grid axis.
    """
    N, H, W, Cin = x_nhwc.shape
    Cout = w_hwio.shape[-1]
    tcin = Cin if Cin <= 256 else 256
    tcout = Cout if Cout <= 512 else 512
    assert Cin % tcin == 0 and Cout % tcout == 0

    xp = jnp.pad(x_nhwc.astype(jnp.bfloat16), ((0, 0), (1, 1), (1, 1), (0, 0)))
    wb = w_hwio.astype(jnp.bfloat16)
    bb = b.astype(jnp.float32).reshape(1, Cout)

    grid = (N, H, Cout // tcout, Cin // tcin)
    return pl.pallas_call(
        functools.partial(_conv3x3_kernel, activation=activation, out_w=W),
        out_shape=jax.ShapeDtypeStruct((N, H, W, Cout), out_dtype),
        grid_spec=pltpu.PrefetchScalarGridSpec(
            num_scalar_prefetch=0,
            grid=grid,
            in_specs=[
                pl.BlockSpec((None, None, W + 2, tcin),
                             lambda n, y, j, k: (n, y, 0, k)),
                pl.BlockSpec((None, None, W + 2, tcin),
                             lambda n, y, j, k: (n, y + 1, 0, k)),
                pl.BlockSpec((None, None, W + 2, tcin),
                             lambda n, y, j, k: (n, y + 2, 0, k)),
                pl.BlockSpec((3, 3, tcin, tcout),
                             lambda n, y, j, k: (0, 0, k, j)),
                pl.BlockSpec((1, tcout), lambda n, y, j, k: (0, j)),
            ],
            out_specs=pl.BlockSpec((None, None, W, tcout),
                                   lambda n, y, j, k: (n, y, 0, j)),
            scratch_shapes=[pltpu.VMEM((W, tcout), jnp.float32)],
        ),
        compiler_params=pltpu.CompilerParams(
            dimension_semantics=("parallel", "parallel", "parallel", "arbitrary")),
    )(xp, xp, xp, wb, bb)


# --------------------------------------------------------------------------
# Pallas kernel 3: one-pass BatchNorm statistics (per-channel sum, sum of squares)
# --------------------------------------------------------------------------
def _bn_stats_kernel(x_ref, s_ref, q_ref):
    i = pl.program_id(0)

    @pl.when(i == 0)
    def _():
        s_ref[...] = jnp.zeros_like(s_ref)
        q_ref[...] = jnp.zeros_like(q_ref)

    x = x_ref[...].astype(jnp.float32)
    s_ref[...] += jnp.sum(x, axis=0, keepdims=True)
    q_ref[...] += jnp.sum(x * x, axis=0, keepdims=True)


def bn_stats(x_flat):
    """Return (mu, inv_std) per channel, BatchNorm2d(affine=False) training mode."""
    M, C = x_flat.shape
    tm, Mp = _row_tile(M)
    xp = x_flat if Mp == M else jnp.pad(x_flat, ((0, Mp - M), (0, 0)))
    s, q = pl.pallas_call(
        _bn_stats_kernel,
        out_shape=(jax.ShapeDtypeStruct((1, C), jnp.float32),
                   jax.ShapeDtypeStruct((1, C), jnp.float32)),
        grid_spec=pltpu.PrefetchScalarGridSpec(
            num_scalar_prefetch=0,
            grid=(Mp // tm,),
            in_specs=[pl.BlockSpec((tm, C), lambda i: (i, 0))],
            out_specs=(pl.BlockSpec((1, C), lambda i: (0, 0)),
                       pl.BlockSpec((1, C), lambda i: (0, 0))),
        ),
        compiler_params=pltpu.CompilerParams(dimension_semantics=("arbitrary",)),
    )(xp)
    mu = s[0] / M
    var = jnp.maximum(q[0] / M - mu * mu, 0.0)       # biased variance (training BN)
    inv = lax.rsqrt(var + 1e-5)
    return mu, inv


# --------------------------------------------------------------------------
# Pallas kernel 4: fused SPADE modulation  (x - mu) * rstd * gamma + beta (+ReLU)
# --------------------------------------------------------------------------
def _spade_mod_kernel(x_ref, gb_ref, mu_ref, inv_ref, o_ref, *, relu, feat):
    x = x_ref[...].astype(jnp.float32)
    g = gb_ref[:, :feat].astype(jnp.float32)
    bt = gb_ref[:, feat:].astype(jnp.float32)
    y = (x - mu_ref[...]) * inv_ref[...] * g + bt
    if relu:
        y = jnp.maximum(y, 0.0)
    o_ref[...] = y.astype(o_ref.dtype)


def spade_modulate(x_flat, gb_flat, mu, inv, relu):
    M, C = x_flat.shape
    tm, Mp = _row_tile(M)
    if Mp != M:
        x_flat = jnp.pad(x_flat, ((0, Mp - M), (0, 0)))
        gb_flat = jnp.pad(gb_flat, ((0, Mp - M), (0, 0)))
    out = pl.pallas_call(
        functools.partial(_spade_mod_kernel, relu=relu, feat=C),
        out_shape=jax.ShapeDtypeStruct((Mp, C), jnp.bfloat16),
        grid_spec=pltpu.PrefetchScalarGridSpec(
            num_scalar_prefetch=0,
            grid=(Mp // tm,),
            in_specs=[
                pl.BlockSpec((tm, C), lambda i: (i, 0)),
                pl.BlockSpec((tm, 2 * C), lambda i: (i, 0)),
                pl.BlockSpec((1, C), lambda i: (0, 0)),
                pl.BlockSpec((1, C), lambda i: (0, 0)),
            ],
            out_specs=pl.BlockSpec((tm, C), lambda i: (i, 0)),
        ),
        compiler_params=pltpu.CompilerParams(dimension_semantics=("parallel",)),
    )(x_flat, gb_flat, mu.reshape(1, C), inv.reshape(1, C))
    return out[:M]


# --------------------------------------------------------------------------
# plain-JAX glue: nearest resize (style map), 2x upsample as broadcast
# --------------------------------------------------------------------------
def nearest_resize(x_nhwc, H, W):
    """F.interpolate(..., mode='nearest') semantics: idx = floor(i * in / out)."""
    N, Hs, Ws, C = x_nhwc.shape
    hi = (jnp.arange(H) * Hs) // H
    wi = (jnp.arange(W) * Ws) // W
    return x_nhwc[:, hi][:, :, wi]


def upsample2x(x_nhwc):
    N, H, W, C = x_nhwc.shape
    x = jnp.broadcast_to(x_nhwc[:, :, None, :, None, :], (N, H, 2, W, 2, C))
    return x.reshape(N, 2 * H, 2 * W, C)


# --------------------------------------------------------------------------
# SPADE / SPADEResBlk / Generator forward
# --------------------------------------------------------------------------
def spade_apply(p, x_nhwc, s_resized, relu_after):
    N, H, W, C = x_nhwc.shape
    t = conv3x3(s_resized, p["conv_w"], p["conv_b"], activation="relu")
    gb = conv3x3(t, p["gb_w"], p["gb_b"])            # fused gamma|beta (Cout = 2C)

    x_flat = x_nhwc.reshape(N * H * W, C)
    gb_flat = gb.reshape(N * H * W, 2 * C)
    mu, inv = bn_stats(x_flat)                       # single-pass batch statistics
    out = spade_modulate(x_flat, gb_flat, mu, inv, relu=relu_after)
    return out.reshape(N, H, W, C)


def spade_resblk(p, x, s_nhwc):
    N, H, W, _ = x.shape
    s_r = nearest_resize(s_nhwc, H, W)               # resized once per block
    y = conv3x3(spade_apply(p["spade_1"], x, s_r, True), p["conv_1_w"], p["conv_1_b"])
    y = conv3x3(spade_apply(p["spade_2"], y, s_r, True), p["conv_2_w"], p["conv_2_b"])
    y_ = conv3x3(spade_apply(p["spade_s"], x, s_r, True), p["conv_s_w"], p["conv_s_b"])
    return y + y_


def generator_forward(params, x, s_nchw):
    B = x.shape[0]
    s = jnp.transpose(s_nchw, (0, 2, 3, 1)).astype(jnp.bfloat16)   # NCHW -> NHWC
    h = matmul_bias(x, params["fc_w"], params["fc_b"])             # fc layer
    C0 = params["fc_w"].shape[1] // 16
    h = h.reshape(B, C0, 4, 4)                                     # torch .view(-1,C0,4,4)
    h = jnp.transpose(h, (0, 2, 3, 1))                             # -> NHWC
    for blk in params["blocks"]:
        h = spade_resblk(blk, h, s)
        h = upsample2x(h)
    y = conv3x3(h, params["out_w"], params["out_b"], activation="tanh",
                out_dtype=jnp.float32)
    return jnp.transpose(y, (0, 3, 1, 2))                          # back to NCHW


# --------------------------------------------------------------------------
# Deterministic parameter init (synthetic) with spectral normalization
# --------------------------------------------------------------------------
def _spectral_sigma(w2d, n_iter=5, eps=1e-12):
    u = jnp.full((w2d.shape[0],), 1.0 / jnp.sqrt(w2d.shape[0]), jnp.float32)
    for _ in range(n_iter):
        v = w2d.T @ u
        v = v / (jnp.linalg.norm(v) + eps)
        u = w2d @ v
        u = u / (jnp.linalg.norm(u) + eps)
    return jnp.dot(u, w2d @ v)


def _sn_conv(key, cin, cout):
    kw, kb = jax.random.split(key)
    w = jax.random.normal(kw, (3, 3, cin, cout), jnp.float32) / jnp.sqrt(9.0 * cin)
    w2d = jnp.transpose(w, (3, 0, 1, 2)).reshape(cout, -1)
    w = w / _spectral_sigma(w2d)
    b = 0.01 * jax.random.normal(kb, (cout,), jnp.float32)
    return w, b


def _sn_linear(key, din, dout):
    kw, kb = jax.random.split(key)
    w = jax.random.normal(kw, (din, dout), jnp.float32) / jnp.sqrt(float(din))
    w = w / _spectral_sigma(w.T)
    b = 0.01 * jax.random.normal(kb, (dout,), jnp.float32)
    return w, b


def _init_spade(key, feat, style):
    k1, k2, k3 = jax.random.split(key, 3)
    cw, cb = _sn_conv(k1, style, 128)
    gw, gb_ = _sn_conv(k2, 128, feat)       # spectral norm applied per-conv,
    bw, bb_ = _sn_conv(k3, 128, feat)       # then gamma/beta weights are fused
    return dict(conv_w=cw, conv_b=cb,
                gb_w=jnp.concatenate([gw, bw], axis=-1),
                gb_b=jnp.concatenate([gb_, bb_], axis=0))


def _init_resblk(key, cin, cout, style):
    ks = jax.random.split(key, 6)
    c1w, c1b = _sn_conv(ks[3], cin, cout)
    c2w, c2b = _sn_conv(ks[4], cout, cout)
    csw, csb = _sn_conv(ks[5], cin, cout)
    return dict(
        spade_1=_init_spade(ks[0], cin, style),
        spade_2=_init_spade(ks[1], cout, style),
        spade_s=_init_spade(ks[2], cin, style),
        conv_1_w=c1w, conv_1_b=c1b,
        conv_2_w=c2w, conv_2_b=c2b,
        conv_s_w=csw, conv_s_b=csb,
    )


def init_generator(key, style_size,
                   cfgs=((1024, 1024), (1024, 1024), (1024, 512),
                         (512, 256), (256, 128), (128, 64)),
                   fc_in=256):
    """Defaults match the original torch Generator (fc 256->16384, 6 res-blocks)."""
    keys = jax.random.split(key, len(cfgs) + 2)
    c0 = cfgs[0][0]
    fc_w, fc_b = _sn_linear(keys[0], fc_in, c0 * 16)
    blocks = [_init_resblk(keys[1 + i], ci, co, style_size)
              for i, (ci, co) in enumerate(cfgs)]
    ow, ob = _sn_conv(keys[-1], cfgs[-1][1], 3)
    return dict(fc_w=fc_w, fc_b=fc_b, blocks=blocks, out_w=ow, out_b=ob)


# --------------------------------------------------------------------------
if __name__ == "__main__":
    # Scaled-down configuration (same forward graph as the original module:
    # fc -> view(-1, C0, 4, 4) -> [SPADEResBlk -> 2x nearest upsample] x K ->
    # 3x3 conv + tanh) so the self-test compiles and runs quickly.
    B, style_size, Hs, Ws = 2, 4, 8, 8
    fc_in = 32
    cfgs = ((32, 32), (32, 32), (32, 16))            # 3 res-blocks -> 32x32 output

    key = jax.random.PRNGKey(0)
    kp, kx, ks = jax.random.split(key, 3)

    params = init_generator(kp, style_size, cfgs=cfgs, fc_in=fc_in)
    x = jax.random.normal(kx, (B, fc_in), jnp.float32)              # latent
    s = jax.random.normal(ks, (B, style_size, Hs, Ws), jnp.float32)  # style map (NCHW)

    y = generator_forward(params, x, s)
    y = jax.block_until_ready(y)

    out_hw = 4 * (2 ** len(cfgs))
    assert y.shape == (B, 3, out_hw, out_hw), y.shape
    assert bool(jnp.all(jnp.isfinite(y)))
    assert float(jnp.max(jnp.abs(y))) <= 1.0 + 1e-6   # tanh output range
    print("KERNEL_OK")
</pallas_src>

<mosaic_0001>
module attributes {stable_mosaic.version = 11 : i64} {
  func.func @_matmul_kernel(%arg0: i32, %arg1: i32, %arg2: i32, %arg3: memref<8x128xbf16, #tpu.memory_space<vmem>>, %arg4: memref<128x256xbf16, #tpu.memory_space<vmem>>, %arg5: memref<1x256xf32, #tpu.memory_space<vmem>>, %arg6: memref<8x256xbf16, #tpu.memory_space<vmem>>, %arg7: memref<8x256xf32, #tpu.memory_space<vmem>>) attributes {dimension_semantics = [#tpu.dimension_semantics<parallel>, #tpu.dimension_semantics<parallel>, #tpu.dimension_semantics<arbitrary>], iteration_bounds = array<i64: 1, 2, 1>, scalar_prefetch = 0 : i64, scratch_operands = 1 : i64, tpu.core_type = #tpu.core_type<tc>, window_params = [{transform_indices = @transform_0, window_bounds = array<i64: 8, 128>}, {transform_indices = @transform_1, window_bounds = array<i64: 128, 256>}, {transform_indices = @transform_2, window_bounds = array<i64: 1, 256>}, {transform_indices = @transform_3, window_bounds = array<i64: 8, 256>}]} {
    %c0_i32 = arith.constant 0 : i32
    %0 = arith.cmpi eq, %arg2, %c0_i32 : i32
    %1 = arith.extui %0 : i1 to i32
    %c0_i32_0 = arith.constant 0 : i32
    %2 = arith.cmpi ne, %1, %c0_i32_0 : i32
    scf.if %2 {
      %cst_10 = arith.constant 0.000000e+00 : f32
      %12 = vector.broadcast %cst_10 : f32 to vector<8x256xf32>
      %c0_11 = arith.constant 0 : index
      %c0_12 = arith.constant 0 : index
      %13 = vector.load %arg5[%c0_11, %c0_12] : memref<1x256xf32, #tpu.memory_space<vmem>>, vector<1x256xf32>
      %14 = vector.broadcast %13 : vector<1x256xf32> to vector<8x256xf32>
      %15 = arith.addf %12, %14 : vector<8x256xf32>
      %c0_13 = arith.constant 0 : index
      %c0_14 = arith.constant 0 : index
      %16 = vector.load %arg7[%c0_13, %c0_14] : memref<8x256xf32, #tpu.memory_space<vmem>>, vector<8x256xf32>
      tpu.vector_store %arg7[%c0_13, %c0_14], %15 {strides = array<i32>} : memref<8x256xf32, #tpu.memory_space<vmem>>, vector<8x256xf32>,
    } else {
    }
    %c0 = arith.constant 0 : index
    %c0_1 = arith.constant 0 : index
    %3 = vector.load %arg7[%c0, %c0_1] : memref<8x256xf32, #tpu.memory_space<vmem>>, vector<8x256xf32>
    %c0_2 = arith.constant 0 : index
    %c0_3 = arith.constant 0 : index
    %4 = vector.load %arg3[%c0_2, %c0_3] : memref<8x128xbf16, #tpu.memory_space<vmem>>, vector<8x128xbf16>
    %c0_4 = arith.constant 0 : index
    %c0_5 = arith.constant 0 : index
    %5 = vector.load %arg4[%c0_4, %c0_5] : memref<128x256xbf16, #tpu.memory_space<vmem>>, vector<128x256xbf16>
    %cst = arith.constant dense<0.000000e+00> : vector<8x256xf32>
    %6 = tpu.matmul %4, %5, %cst {dimension_numbers = #tpu.dot_dimension_numbers<[1], [0], [0], [1], [0, 0, 1, 1], [], []>} : vector<8x128xbf16>, vector<128x256xbf16>, vector<8x256xf32> -> vector<8x256xf32>
    %7 = arith.addf %3, %6 : vector<8x256xf32>
    %c0_6 = arith.constant 0 : index
    %c0_7 = arith.constant 0 : index
    %8 = vector.load %arg7[%c0_6, %c0_7] : memref<8x256xf32, #tpu.memory_space<vmem>>, vector<8x256xf32>
    tpu.vector_store %arg7[%c0_6, %c0_7], %7 {strides = array<i32>} : memref<8x256xf32, #tpu.memory_space<vmem>>, vector<8x256xf32>,
    %c0_i32_8 = arith.constant 0 : i32
    %9 = arith.cmpi eq, %arg2, %c0_i32_8 : i32
    %10 = arith.extui %9 : i1 to i32
    %c0_i32_9 = arith.constant 0 : i32
    %11 = arith.cmpi ne, %10, %c0_i32_9 : i32
    scf.if %11 {
      %c0_10 = arith.constant 0 : index
      %c0_11 = arith.constant 0 : index
      %12 = vector.load %arg7[%c0_10, %c0_11] : memref<8x256xf32, #tpu.memory_space<vmem>>, vector<8x256xf32>
      %13 = arith.truncf %12 : vector<8x256xf32> to vector<8x256xbf16>
      %c0_12 = arith.constant 0 : index
      %c0_13 = arith.constant 0 : index
      %14 = vector.load %arg6[%c0_12, %c0_13] : memref<8x256xbf16, #tpu.memory_space<vmem>>, vector<8x256xbf16>
      tpu.vector_store %arg6[%c0_12, %c0_13], %13 {strides = array<i32>} : memref<8x256xbf16, #tpu.memory_space<vmem>>, vector<8x256xbf16>,
    } else {
    }
    return
  }
  func.func @transform_0(%arg0: i32, %arg1: i32, %arg2: i32) -> (i32, i32) {
    %c0_i32 = arith.constant 0 : i32
    return %arg0, %arg2 : i32, i32
  }
  func.func @transform_1(%arg0: i32, %arg1: i32, %arg2: i32) -> (i32, i32) {
    %c0_i32 = arith.constant 0 : i32
    return %arg2, %arg1 : i32, i32
  }
  func.func @transform_2(%arg0: i32, %arg1: i32, %arg2: i32) -> (i32, i32) {
    %c0_i32 = arith.constant 0 : i32
    %c0_i32_0 = arith.constant 0 : i32
    return %c0_i32, %arg1 : i32, i32
  }
  func.func @transform_3(%arg0: i32, %arg1: i32, %arg2: i32) -> (i32, i32) {
    %c0_i32 = arith.constant 0 : i32
    return %arg0, %arg1 : i32, i32
  }
}

</mosaic_0001>

<bundles_post_ra>
// kernel: tpu_custom_call.1
= control target key start
LH: loop header
LB: loop body
LE: loop exit
PB: predicated region body
PF: predicated region fallthrough
CT: control target
= control target key end

     0   :  { %8 = vsyncpa [#allocation4], 0  ;;  %s1166_s0 = inlined_call_operand.hbm [shape: bf16[8,128], index: 0, kind: input, shape index: {}]   ;;  %s1167_s1 = inlined_call_operand.hbm [shape: bf16[128,512], index: 1, kind: input, shape index: {}]   ;;  %s1168_s2 = inlined_call_operand.hbm [shape: f32[1,512], index: 2, kind: input, shape index: {}]   ;;  %s1169_s3 = inlined_call_operand.hbm [shape: bf16[8,512], index: 3, kind: output, shape index: {}]  }
   0x1   :  { %9 = vsyncpa [#allocation7], 0 }
   0x2   :  { %11 = vsyncpa [#allocation7 + $0x1], 0 }
   0x3   :  { %12 = vsyncpa [#allocation5], 0 }
   0x4   :  { %14 = vsyncpa [#allocation5 + $0x1], 0  ;;  %s958_s12 = smov 0   ;;  %s960_s13 = smov 0  }
   0x5   :  { %s962_s14 = smov 0   ;;  %s964_s15 = smov 0  }
   0x6   :  { %s966_s16 = smov 0   ;;  %s968_s17 = smov 0  }
   0x7 LB: > { %s35_s18 = sadd.s32 1, %s928_s16  ;;  %s76_s19 = sadd.s32 1, %s920_s14  ;;  %s932_s17 = sphi %s968_s17, %s20_s17   ;;  %s928_s16 = sphi %s966_s16, %s1180_s16   ;;  %s924_s15 = sphi %s964_s15, %s1179_s15   ;;  %s920_s14 = sphi %s962_s14, %s1178_s14   ;;  %s916_s13 = sphi %s960_s13, %s1177_s13   ;;  %s912_s12 = sphi %s958_s12, %s1176_s12  }
   0x8   : > { %p37_p0 = scmp.ge.s32.totalorder %s35_s18, 2  ;;  %p83_p1 = scmp.ne.s32.totalorder %s920_s14, %s916_s13 }
   0x9   : > { %p84_p2 = scmp.eq.s32.totalorder %s932_s17, 0  ;;  %p577_p3 = scmp.ge.s32.totalorder %s932_s17, 2 }
   0xa   : > { %s1182_s18 = smov (%p37_p0, %s35_s18), 0  ;;  %p701_p5 = scmp.lt.s32.totalorder %s932_s17, 2 }
   0xb   : > { %p999_p4 = por %p84_p2, %p83_p1  ;;  %s72_s21 = ssub.s32 %s928_s16, %s1182_s18 }
   0xc   : > { %s182_s22 = sand.u32 1, %s932_s17   ;;  %p74_p6 = scmp.eq.s32.totalorder %s72_s21, 0 }
   0xd   : > { %s184_s23 = sand.u32 1, %s920_s14   ;;  %s657_s24 = sshll.u32 %s928_s16, 3 }
   0xe   : > { %s1010_s25 = scalar_select %p74_p6, %s920_s14, %s76_s19  }
   0xf   : > { %s578_s26 = sshll.u32 %s184_s23, 7  ;;  %s194_s29 = scalar_lea.hbm %s1167_s1, %s657_s24 }
  0x10   : > { %s195_s30 = sshll.u32 %s194_s29, 4  ;;  %s186_s4 = scalar_lea.vmem [#allocation6], %s578_s26  ;;  %s196_s30 = int_to_ptr.hbm [resolvable:$true] %s195_s30 }
  0x11   : > { %s197_s5 = sshll.u32 %s186_s4, 4  ;;  %p1021_p7 = pnand %p701_p5, %p999_p4  ;;  %s198_s5 = int_to_ptr.vmem [resolvable:$true] %s197_s5 }
  0x12   : > { %s1025_s7 = scalar_lea.sflag [#allocation7], %s182_s22  ;;  %s934_s8 = smov 256  }
  0x13   : > { %s935_s9 = smov 128   ;;  %s936_s10 = smov 8  }
  0x14   : > { %692 = dma.hbm_to_vmem [thread:$0]  (!%p1021_p7), %s196_s30, 2048, %s198_s5, %s1025_s7, %s934_s8, %s935_s9, %s936_s10  }
  0x15   : > { %s1031_s11 = sadd.s32 4294967295, %s932_s17   ;;  %s574_s19 = sadd.s32 4294967294, %s932_s17  }
  0x16   : > { %p89_p8 = scmp.ne.s32.totalorder %s916_s13, %s912_s12  ;;  %p90_p9 = scmp.eq.s32.totalorder %s1031_s11, 0 }
  0x17   : > { %p141_p10 = scmp.eq.s32.totalorder %s1031_s11, 1  ;;  %p147_p11 = scmp.eq.s32.totalorder %s574_s19, 1 }
  0x18   : > { %p1040_p12 = por %p90_p9, %p89_p8  ;;  %p575_p13 = scmp.ge.s32.totalorder %s932_s17, 1 }
  0x19   : > { %p1048_p0 = por %p141_p10, %p83_p1  ;;  %p1052_p2 = por %p147_p11, %p89_p8 }
  0x1a   : > { %p154_p4 = scmp.lt.s32.totalorder %s932_s17, 3  ;;  %s169_s27 = sshll.u32 %s1166_s0, 4  ;;  %s170_s27 = int_to_ptr.hbm [resolvable:$true] %s169_s27 }
  0x1b   : > { %s937_s29 = smov [#allocation3]   ;;  %s581_s4 = sshll.u32 %s184_s23, 1 }
  0x1c   : > { %p1060_p5 = pnand %p575_p13, %p154_p4  ;;  %s171_s30 = sshll.u32 %s937_s29, 4  ;;  %s172_s30 = int_to_ptr.vmem [resolvable:$true] %s171_s30 }
  0x1d   : > { %s582_s5 = sshll.u32 %s928_s16, 1  ;;  %s211_s24 = scalar_lea.vmem [#allocation8], %s581_s4 }
  0x1e   : > { %p685_p1 = pneg %p1060_p5  ;;  %s215_s10 = scalar_lea.hbm %s1168_s2, %s582_s5 }
  0x1f   : > { %s217_s19 = sshll.u32 %s215_s10, 4  ;;  %s219_s26 = sshll.u32 %s211_s24, 4  ;;  %s218_s19 = int_to_ptr.hbm [resolvable:$true] %s217_s19  ;;  %s220_s26 = int_to_ptr.vmem [resolvable:$true] %s219_s26 }
  0x20   : > { %p686_p6 = pnand %p685_p1, %p90_p9  ;;  %228 = sbr.rel (%p1060_p5) target bundleno = 211 (0xd3), region = 32 }
  0x21   : > { %695 = dma.hbm_to_vmem [thread:$0]  (!%p1021_p7), %s218_s19, 32, %s220_s26, %s1025_s7  }
  0x22   : > { %688 = dma.hbm_to_vmem [thread:$0]  (!%p686_p6), %s170_s27, 64, %s172_s30, [#allocation4]  }
  0x25   : > { %899 = dma.done.wait (%p90_p9), [#allocation4], 64  }
  0x26   : > { %901 = vsyncadd (%p90_p9), [#allocation4], 4294967232  ;;  %s235_s23 = sand.u32 1, %s1031_s11   ;;  %s1085_s29 = sand.u32 1, %s916_s13  }
  0x27   : > { %s585_s27 = sshll.u32 %s1085_s29, 7  ;;  %s236_s30 = scalar_lea.sflag [#allocation7], %s235_s23 }
  0x28   : > { %s1088_s6 = scalar_lea.vmem [#allocation6], %s585_s27 }
  0x29   : > { %903 = dma.done.wait (%p1040_p12), %s236_s30, 2080  }
  0x2a   : > { %905 = vsyncadd (%p1040_p12), %s236_s30, 4294965216  ;;  %v646_v0 = vld [vmem:[%s1088_s6 + $0x70] sm:$0xf]  ;;  %v673_v1 = vld [vmem:[%s1088_s6 + $0x74] sm:$0xf0]  ;;  %s586_s7 = sshll.u32 %s1085_s29, 1 }
  0x2b   : > { %v672_v2 = vld [vmem:[%s1088_s6 + $0x74] sm:$0xf]  ;;  %v647_v3 = vor.u32 %v673_v1, %v646_v0  ;;  %v648_v4 = vld [vmem:[%s1088_s6 + $0x78] sm:$0xf0]  ;;  %v638_v5 = vld [vmem:[%s1088_s6 + $0x60] sm:$0xf] }
  0x2c   : > { %v671_v6 = vld [vmem:[%s1088_s6 + $0x64] sm:$0xf0]  ;;  %v651_v7 = vor.u32 %v672_v2, %v648_v4  ;;  %v670_v8 = vld [vmem:[%s1088_s6 + $0x64] sm:$0xf]  ;;  %v640_v9 = vld [vmem:[%s1088_s6 + $0x68] sm:$0xf0] }
  0x2d   : > { %395 = vmatpush.bf16.msra.mxu0 %v647_v3  ;;  %v639_v10 = vor.u32 %v671_v6, %v638_v5  ;;  %v643_v11 = vor.u32 %v670_v8, %v640_v9  ;;  %v630_v12 = vld [vmem:[%s1088_s6 + $0x50] sm:$0xf]  ;;  %v669_v13 = vld [vmem:[%s1088_s6 + $0x54] sm:$0xf0]  ;;  %v668_v14 = vld [vmem:[%s1088_s6 + $0x54] sm:$0xf] }
  0x2e   : > { %408 = vmatpush.bf16.msra.mxu1 %v651_v7  ;;  %v632_v15 = vld [vmem:[%s1088_s6 + $0x58] sm:$0xf0]  ;;  %v631_v16 = vor.u32 %v669_v13, %v630_v12  ;;  %v622_v18 = vld [vmem:[%s1088_s6 + $0x40] sm:$0xf]  ;;  %v667_v19 = vld [vmem:[%s1088_s6 + $0x44] sm:$0xf0] }
  0x2f   : > { %v635_v17 = vor.u32 %v668_v14, %v632_v15  ;;  %v666_v20 = vld [vmem:[%s1088_s6 + $0x44] sm:$0xf]  ;;  %v624_v21 = vld [vmem:[%s1088_s6 + $0x48] sm:$0xf0]  ;;  %v623_v22 = vor.u32 %v667_v19, %v622_v18  ;;  %v614_v24 = vld [vmem:[%s1088_s6 + $0x30] sm:$0xf] }
  0x30   : > { %v627_v23 = vor.u32 %v666_v20, %v624_v21  ;;  %v665_v25 = vld [vmem:[%s1088_s6 + $0x34] sm:$0xf0]  ;;  %v664_v26 = vld [vmem:[%s1088_s6 + $0x34] sm:$0xf]  ;;  %v616_v27 = vld [vmem:[%s1088_s6 + $0x38] sm:$0xf0] }
  0x31   : > { %396 = vmatpush.bf16.msra.mxu0 %v639_v10  ;;  %v615_v28 = vor.u32 %v665_v25, %v614_v24  ;;  %v619_v29 = vor.u32 %v664_v26, %v616_v27  ;;  %v606_v30 = vld [vmem:[%s1088_s6 + $0x20] sm:$0xf]  ;;  %v663_v31 = vld [vmem:[%s1088_s6 + $0x24] sm:$0xf0]  ;;  %v662_v32 = vld [vmem:[%s1088_s6 + $0x24] sm:$0xf] }
  0x32   : > { %409 = vmatpush.bf16.msra.mxu1 %v643_v11  ;;  %v608_v33 = vld [vmem:[%s1088_s6 + $0x28] sm:$0xf0]  ;;  %v607_v34 = vor.u32 %v663_v31, %v606_v30  ;;  %v598_v36 = vld [vmem:[%s1088_s6 + $0x10] sm:$0xf]  ;;  %v661_v37 = vld [vmem:[%s1088_s6 + $0x14] sm:$0xf0] }
  0x33   : > { %v611_v35 = vor.u32 %v662_v32, %v608_v33  ;;  %v660_v38 = vld [vmem:[%s1088_s6 + $0x14] sm:$0xf]  ;;  %v600_v39 = vld [vmem:[%s1088_s6 + $0x18] sm:$0xf0]  ;;  %v599_v40 = vor.u32 %v661_v37, %v598_v36  ;;  %v590_v42 = vld [vmem:[%s1088_s6] sm:$0xf] }
  0x34   : > { %v603_v41 = vor.u32 %v660_v38, %v600_v39  ;;  %v659_v43 = vld [vmem:[%s1088_s6 + $0x4] sm:$0xf0]  ;;  %v658_v44 = vld [vmem:[%s1088_s6 + $0x4] sm:$0xf]  ;;  %v592_v45 = vld [vmem:[%s1088_s6 + $0x8] sm:$0xf0] }
  0x35   : > { %397 = vmatpush.bf16.msra.mxu0 %v631_v16  ;;  %v591_v46 = vor.u32 %v659_v43, %v590_v42  ;;  %v595_v47 = vor.u32 %v658_v44, %v592_v45  ;;  %v298_v48 = vld [vmem:[#allocation3] sm:$0xf]  ;;  %s249_s11 = scalar_lea.vmem [#allocation8], %s586_s7  ;;  %s587_s20 = sshll.u32 %s1085_s29, 3 }
  0x36   : > { %410 = vmatpush.bf16.msra.mxu1 %v635_v17  ;;  %v286_v49 = vld [vmem:[%s249_s11] sm:$0x3]  ;;  %s674_s28 = sshll.u32 %s924_s15, 3  ;;  %s277_s9 = scalar_lea.vmem [#allocation9], %s587_s20 }
  0x37   : > { %v288_v50 = vperm.slane %v286_v49, 0  ;;  %v289_v51 = vperm.slane %v286_v49, 1  ;;  %s446_s8 = scalar_lea.hbm %s1169_s3, %s674_s28  ;;  %s448_s10 = sshll.u32 %s277_s9, 4  ;;  %s449_s10 = int_to_ptr.vmem [resolvable:$true] %s448_s10 }
  0x38   : > { %s450_s19 = sshll.u32 %s446_s8, 4  ;;  %s433_s24 = scalar_lea.sflag [#allocation5], %s1085_s29  ;;  %s451_s19 = int_to_ptr.hbm [resolvable:$true] %s450_s19 }
  0x39   : > { %398 = vmatpush.bf16.msra.mxu0 %v623_v22  ;;  %s860_s15 = sshra.s32 %s451_s19, 4  ;;  %s866_s30 = scalar_lea.hbm %s1169_s3, 16  ;;  %s861_s15 = int_to_ptr.hbm [resolvable:$true] %s860_s15 }
  0x3a   : > { %411 = vmatpush.bf16.msra.mxu1 %v627_v23  ;;  %s862_s26 = scalar_lea.hbm %s861_s15, 8  ;;  %p867_p10 = scmp.lt.s32.totalorder %s861_s15, %s1169_s3 }
  0x3b   : > { %p863_p7 = scmp.ne.s32.totalorder %s861_s15, %s862_s26  ;;  %p868_p11 = scmp.lt.s32.totalorder %s866_s30, %s862_s26 }
  0x3d   : > { %399 = vmatpush.bf16.msra.mxu0 %v615_v28  ;;  %p864_p8 = pnand %p863_p7, %p1048_p0  ;;  %p869_p12 = por %p868_p11, %p867_p10 }
  0x3e   : > { %412 = vmatpush.bf16.msra.mxu1 %v619_v29 }
  0x3f   : > { %p865_p9 = pneg %p864_p8 }
  0x41   : > { %400 = vmatpush.bf16.msra.mxu0 %v607_v34  ;;  %p870_p13 = pnand %p869_p12, %p865_p9 }
  0x42   : > { %413 = vmatpush.bf16.msra.mxu1 %v611_v35 }
  0x45   : > { %401 = vmatpush.bf16.msra.mxu0 %v599_v40 }
  0x46   : > { %414 = vmatpush.bf16.msra.mxu1 %v603_v41 }
  0x49   : > { %402 = vmatpush.bf16.msra.mxu0 %v591_v46 }
  0x4a   : > { %415 = vmatpush.bf16.msra.mxu1 %v595_v47 }
  0x4c   : > { %403 = vmatmul.bf16.vlgmr.msra.gmra.mxu0 %v298_v48 }
  0x4d   : > { %416 = vmatmul.bf16.vlgmr.msra.gmra.mxu1 %v298_v48 }
  0xc9   : > { %v404_v52 = vpop.f32.mrf.mxu0 }
  0xca   : > { %v421_v53 = vadd.f32 %v404_v52, %v288_v50  ;;  %v417_v54 = vpop.f32.mrf.mxu1 }
  0xcb   : > { %v422_v55 = vadd.f32 %v417_v54, %v289_v51 }
  0xcd   : > { %v430_v56 = vpack.c.bf16 %v422_v55, %v421_v53 }
  0xcf   : > { %431 = vst [vmem:[%s277_s9] sm:$0xff] %v430_v56 }
  0xd0   : > { %873 = shalt.err (!%p870_p13)
}
  0xd1   : > { %683 = dma.vmem_to_hbm [thread:$0]  (%p1048_p0), %s449_s10, 128, %s451_s19, %s433_s24   ;;  %v406_v57 = vpop.f32.mrf.mxu0 }
  0xd2   : > { %v419_v58 = vpop.f32.mrf.mxu1 }
  0xd3 PF: > { %s462_s29 = sand.u32 1, %s912_s12   ;;  %p697_p4 = pnand %p577_p3, %p1052_p2 }
  0xd4   : > { %s463_s11 = scalar_lea.sflag [#allocation5], %s462_s29 }
  0xd5   : > { %p698_p5 = pneg %p697_p4 }
  0xd7   : > { %907 = dma.done.wait (%p698_p5), %s463_s11, 128  }
  0xd8   : > { %909 = vsyncadd (%p698_p5), %s463_s11, 4294967168  ;;  %s20_s17 = sadd.s32 1, %s932_s17   ;;  %s1176_s12 = smov %s916_s13 }
  0xd9   : > { %p17_p1 = scmp.ge.s32.totalorder %s20_s17, 4   ;;  %s1177_s13 = smov %s920_s14 }
  0xda   : > { %s1178_s14 = smov %s1010_s25  ;;  %s1179_s15 = smov %s928_s16 }
  0xdb   : > { %s1180_s16 = smov %s1182_s18  ;;  %19 = sbr.rel (!%p17_p1) target bundleno = 7 (0x7), region = 102 }
  0xe0   :  { %469 = vsyncpa [#allocation4], 1 }
  0xe1   :  { %471 = vsyncpa [#allocation4 + $0x1], 1 }
  0xe2   :  { %472 = vsyncpa [#allocation7], 1 }
  0xe3   :  { %474 = vsyncpa [#allocation7 + $0x1], 1 }
  0xe4   :  { %475 = vsyncpa [#allocation5], 1 }
  0xe5   :  { %477 = vsyncpa [#allocation5 + $0x1], 1 }

</bundles_post_ra>
